<compile_context>
chip_gen: v7x
topology: tpu7x:2x2x1
jax: 0.10.0
libtpu: 0.0.40
codegen_flags: <defaults>
</compile_context>

<pallas_src>
import functools
import math

import jax
import jax.numpy as jnp
from jax.experimental import pallas as pl
from jax.experimental.pallas import tpu as pltpu

EPS = 1e-06
_LANES = 128

# transform codes per channel role
_IDENTITY, _SOFTPLUS, _SIGMOID, _SIGMOID_U = 0, 1, 2, 3


def _row_codes(loss: str, grad_u: str):
    """Static per-channel transform codes, mirroring PostProcess.forward."""
    if loss == "NormalCRPS":
        return (_IDENTITY, _SOFTPLUS)
    if loss == "MixedNormalCRPS":
        return (_IDENTITY, _SOFTPLUS, _SIGMOID)
    if loss == "MixedLoss":
        if grad_u == "True":
            return (_IDENTITY, _SOFTPLUS, _SIGMOID, _SOFTPLUS, _SIGMOID_U)
        return (_IDENTITY, _SOFTPLUS, _SIGMOID, _SOFTPLUS)
    raise ValueError(f"unknown loss {loss!r}")


def _round_up(a: int, b: int) -> int:
    return (a + b - 1) // b * b


def _postprocess_kernel(x_ref, o_ref, *, codes):
    # x_ref/o_ref: (block_rows, Lr) in the input dtype, VMEM.
    C = len(codes)
    x = x_ref[...].astype(jnp.float32)
    _, lanes = x.shape

    # Channel of each element = lane % C.  Lr is a multiple of C, so the
    # pattern is purely lane-periodic (block/row independent).  Computed with
    # an exact float floor-division (lane < Lr <= 640, far below 2^24; the
    # division is correctly rounded, so multiples of C floor exactly).
    lane = jax.lax.broadcasted_iota(jnp.int32, (1, lanes), 1).astype(jnp.float32)
    chan = lane - jnp.floor(lane / float(C)) * float(C)   # exact ints in [0, C)

    def _mask(chs):
        m = chan == float(chs[0])
        for c in chs[1:]:
            m = m | (chan == float(c))
        return m

    sp_ch = [i for i, c in enumerate(codes) if c == _SOFTPLUS]
    sg_ch = [i for i, c in enumerate(codes) if c == _SIGMOID]
    su_ch = [i for i, c in enumerate(codes) if c == _SIGMOID_U]

    out = x  # identity channels (mu)

    if sp_ch or sg_ch or su_ch:
        e = jnp.exp(-jnp.abs(x))                 # shared EUP exp for all transforms

    if sp_ch:
        # softplus(x) = max(x, 0) + log1p(exp(-|x|))
        softplus = jnp.maximum(x, 0.0) + jnp.log1p(e) + EPS
        out = jnp.where(_mask(sp_ch), softplus, out)

    if sg_ch or su_ch:
        # sigmoid(x) = 1/(1+e) for x>=0, e/(1+e) for x<0  (numerically stable)
        sigmoid = jnp.where(x >= 0.0, 1.0, e) / (1.0 + e)
        if sg_ch:
            out = jnp.where(_mask(sg_ch), sigmoid, out)
        if su_ch:
            out = jnp.where(_mask(su_ch), sigmoid * 2.12, out)

    o_ref[...] = out.astype(o_ref.dtype)


def post_process(x, loss: str, grad_u: str = "False", *,
                 target_block_bytes: int = 2 << 20):
    """JAX/Pallas equivalent of PostProcess(loss, grad_u)(x).

    x: (S, C) float array with C matching the loss config. Returns (S, C),
    same dtype as the input.
    """
    codes = _row_codes(loss, grad_u)
    S, C = x.shape
    assert C == len(codes), f"expected C={len(codes)} for loss={loss}, got {C}"

    dtype = x.dtype
    itemsize = jnp.dtype(dtype).itemsize

    # Lane-dense flat view: row length Lr = lcm(128, C) so each row starts at
    # a flat offset divisible by C and channel = lane % C.
    Lr = _LANES * C // math.gcd(_LANES, C)
    N = S * C
    R = pl.cdiv(N, Lr)
    R_pad = max(8, _round_up(R, 8))
    N_pad = R_pad * Lr

    flat = x.reshape(-1)
    if N_pad != N:
        # Only when the flat size is not already (8*Lr)-aligned.
        flat = jnp.pad(flat, (0, N_pad - N))
    x2d = flat.reshape(R_pad, Lr)

    # Block sizing: ~target_block_bytes per buffer (4 double-buffered buffers
    # stay well under v5e/v6e/v7x default scoped VMEM), at least 2 grid steps
    # when possible so v7x can shard the parallel axis over both TensorCores.
    br = max(8, (target_block_bytes // (Lr * itemsize)) // 8 * 8)
    br = min(br, max(8, _round_up(pl.cdiv(R_pad, 2), 8)))
    br = min(br, R_pad)
    grid = (pl.cdiv(R_pad, br),)

    kernel = functools.partial(_postprocess_kernel, codes=codes)
    out2d = pl.pallas_call(
        kernel,
        out_shape=jax.ShapeDtypeStruct((R_pad, Lr), dtype),
        grid_spec=pltpu.PrefetchScalarGridSpec(
            num_scalar_prefetch=0,
            grid=grid,
            in_specs=[pl.BlockSpec((br, Lr), lambda i: (i, 0))],
            out_specs=pl.BlockSpec((br, Lr), lambda i: (i, 0)),
        ),
        compiler_params=pltpu.CompilerParams(
            dimension_semantics=("parallel",)),
    )(x2d)

    out = out2d.reshape(-1)
    if N_pad != N:
        out = out[:N]
    return out.reshape(S, C)


def _reference(x, loss, grad_u):
    """Pure-JAX reference mirroring the PyTorch forward."""
    x = x.astype(jnp.float32)
    cols = jnp.split(x, x.shape[-1], axis=-1)
    if loss == "NormalCRPS":
        mu, sigma = cols
        return jnp.concatenate([mu, jax.nn.softplus(sigma) + EPS], axis=-1)
    if loss == "MixedNormalCRPS":
        mu, sigma, p = cols
        return jnp.concatenate(
            [mu, jax.nn.softplus(sigma) + EPS, jax.nn.sigmoid(p)], axis=-1)
    if loss == "MixedLoss":
        if grad_u == "True":
            mu, sigma, p, sigma_u, u = cols
            return jnp.concatenate(
                [mu, jax.nn.softplus(sigma) + EPS, jax.nn.sigmoid(p),
                 jax.nn.softplus(sigma_u) + EPS, jax.nn.sigmoid(u) * 2.12],
                axis=-1)
        mu, sigma, p, sigma_u = cols
        return jnp.concatenate(
            [mu, jax.nn.softplus(sigma) + EPS, jax.nn.sigmoid(p),
             jax.nn.softplus(sigma_u) + EPS], axis=-1)
    raise ValueError(loss)


if __name__ == "__main__":
    key = jax.random.PRNGKey(0)

    # (loss, grad_u, C, S) — includes unaligned S (padding path) and a case
    # large enough to hit the multi-block / ragged-last-block path.
    configs = [
        ("NormalCRPS", "False", 2, 256),
        ("MixedNormalCRPS", "False", 3, 200),
        ("MixedNormalCRPS", "False", 3, 2500),
        ("MixedLoss", "False", 4, 256),
        ("MixedLoss", "True", 5, 173),
    ]

    ok = True
    for i, (loss, grad_u, C, S) in enumerate(configs):
        k = jax.random.fold_in(key, i)
        x = jax.random.normal(k, (S, C), dtype=jnp.float32) * 2.0
        out = jax.block_until_ready(post_process(x, loss, grad_u))
        ref = _reference(x, loss, grad_u)
        if out.shape != (S, C):
            ok = False
        if not jnp.allclose(out, ref, atol=1e-5, rtol=1e-5):
            ok = False

    print("KERNEL_OK" if ok else "KERNEL_MISMATCH")
</pallas_src>

<mosaic_0001>
module attributes {stable_mosaic.version = 11 : i64} {
  func.func @_postprocess_kernel(%arg0: i32, %arg1: memref<8x128xf32, #tpu.memory_space<vmem>>, %arg2: memref<8x128xf32, #tpu.memory_space<vmem>>) attributes {dimension_semantics = [#tpu.dimension_semantics<parallel>], iteration_bounds = array<i64: 1>, scalar_prefetch = 0 : i64, scratch_operands = 0 : i64, tpu.core_type = #tpu.core_type<tc>, window_params = [{transform_indices = @transform_0, window_bounds = array<i64: 8, 128>}, {transform_indices = @transform_1, window_bounds = array<i64: 8, 128>}]} {
    %c0 = arith.constant 0 : index
    %c0_0 = arith.constant 0 : index
    %0 = vector.load %arg1[%c0, %c0_0] : memref<8x128xf32, #tpu.memory_space<vmem>>, vector<8x128xf32>
    %1 = tpu.iota {dimensions = array<i32: 1>} : vector<1x128xi32>
    %2 = arith.sitofp %1 : vector<1x128xi32> to vector<1x128xf32>
    %cst = arith.constant 2.000000e+00 : f32
    %3 = vector.broadcast %cst : f32 to vector<1x128xf32>
    %4 = arith.divf %2, %3 : vector<1x128xf32>
    %5 = math.floor %4 : vector<1x128xf32>
    %cst_1 = arith.constant 2.000000e+00 : f32
    %6 = vector.broadcast %cst_1 : f32 to vector<1x128xf32>
    %7 = arith.mulf %5, %6 : vector<1x128xf32>
    %8 = arith.subf %2, %7 : vector<1x128xf32>
    %9 = math.absf %0 : vector<8x128xf32>
    %cst_2 = arith.constant 0.000000e+00 : f32
    %10 = vector.broadcast %cst_2 : f32 to vector<8x128xf32>
    %11 = arith.subf %10, %9 : vector<8x128xf32>
    %12 = math.exp %11 : vector<8x128xf32>
    %cst_3 = arith.constant 0.000000e+00 : f32
    %13 = vector.broadcast %cst_3 : f32 to vector<8x128xf32>
    %14 = arith.maximumf %0, %13 : vector<8x128xf32>
    %15 = math.log1p %12 : vector<8x128xf32>
    %16 = arith.addf %14, %15 : vector<8x128xf32>
    %cst_4 = arith.constant 9.99999997E-7 : f32
    %17 = vector.broadcast %cst_4 : f32 to vector<8x128xf32>
    %18 = arith.addf %16, %17 : vector<8x128xf32>
    %cst_5 = arith.constant 1.000000e+00 : f32
    %19 = vector.broadcast %cst_5 : f32 to vector<1x128xf32>
    %20 = arith.cmpf oeq, %8, %19 : vector<1x128xf32>
    %21 = vector.shape_cast %20 : vector<1x128xi1> to vector<1x128xi1>
    %22 = vector.broadcast %21 : vector<1x128xi1> to vector<8x128xi1>
    %23 = arith.select %22, %18, %0 : vector<8x128xi1>, vector<8x128xf32>
    %c0_6 = arith.constant 0 : index
    %c0_7 = arith.constant 0 : index
    %24 = vector.load %arg2[%c0_6, %c0_7] : memref<8x128xf32, #tpu.memory_space<vmem>>, vector<8x128xf32>
    tpu.vector_store %arg2[%c0_6, %c0_7], %23 {strides = array<i32>} : memref<8x128xf32, #tpu.memory_space<vmem>>, vector<8x128xf32>,
    return
  }
  func.func @transform_0(%arg0: i32) -> (i32, i32) {
    %c0_i32 = arith.constant 0 : i32
    %c0_i32_0 = arith.constant 0 : i32
    return %arg0, %c0_i32 : i32, i32
  }
  func.func @transform_1(%arg0: i32) -> (i32, i32) {
    %c0_i32 = arith.constant 0 : i32
    %c0_i32_0 = arith.constant 0 : i32
    return %arg0, %c0_i32 : i32, i32
  }
}

</mosaic_0001>

<bundles_post_ra>
// kernel: tpu_custom_call.1
= control target key start
LH: loop header
LB: loop body
LE: loop exit
PB: predicated region body
PF: predicated region fallthrough
CT: control target
= control target key end

     0   :  { %6 = vsyncpa [#allocation3], 0  ;;  %s156_s0 = inlined_call_operand.hbm [shape: f32[8,128], index: 0, kind: input, shape index: {}]   ;;  %s157_s1 = inlined_call_operand.hbm [shape: f32[8,128], index: 1, kind: output, shape index: {}]  }
   0x1   :  { %7 = vsyncpa [#allocation4], 0  ;;  %s120_s6 = smov [#allocation2]   ;;  %s72_s10 = scalar_lea.hbm %s156_s0, 128 }
   0x2   :  { %s14_s7 = sshll.u32 %s120_s6, 4  ;;  %p73_p0 = scmp.ne.s32.totalorder %s156_s0, %s72_s10  ;;  %s15_s7 = int_to_ptr.vmem [resolvable:$true] %s14_s7 }
   0x3   :  { %p76_p1 = scmp.lt.u32.totalorder %s72_s10, %s156_s0 }
   0x5   :  { %p78_p2 = pnand %p76_p1, %p73_p0 }
   0x7   :  { %81 = shalt.err (!%p78_p2)
}
   0x8   :  { %s82_s15 = scalar_lea.vmem %s15_s7, 128  ;;  %p87_p4 = scmp.lt.s32.totalorder %s15_s7, %s15_s7 }
   0x9   :  { %p83_p3 = scmp.ne.s32.totalorder %s15_s7, %s82_s15  ;;  %p88_p5 = scmp.lt.s32.totalorder %s82_s15, %s82_s15 }
   0xb   :  { %p89_p6 = por %p88_p5, %p87_p4 }
   0xd   :  { %p90_p7 = pnand %p89_p6, %p83_p3 }
   0xf   :  { %93 = shalt.err (!%p90_p7)
}
  0x10   :  { %17 = dma.hbm_to_vmem [thread:$0]  %s156_s0, 128, %s15_s7, [#allocation3]  }
  0x11   :  { %116 = dma.done.wait [#allocation3], 128  }
  0x12   :  { %117 = vsyncadd [#allocation3], 4294967168  ;;  %v21_v0 = vld [vmem:[#allocation2] sm:$0xff]  ;;  %v22_v4 = vlaneseq  ;;  %s121_s0 = smov [#allocation5]  }
  0x13   :  { %v30_v1 = vand.u32 2147483647, %v21_v0  ;;  %v34_v17 = vmax.f32 %v21_v0, 0.0  ;;  %s57_s18 = sshll.u32 %s121_s0, 4  ;;  %s58_s18 = int_to_ptr.vmem [resolvable:$true] %s57_s18 }
  0x14   :  { %v23_v5 = vand.u32 127, %v22_v4  ;;  %s94_s19 = scalar_lea.vmem %s58_s18, 128  ;;  %p99_p9 = scmp.lt.s32.totalorder %s58_s18, %s58_s18 }
  0x15   :  { %v31_v2 = vsub.f32 0.0, %v30_v1  ;;  %p95_p8 = scmp.ne.s32.totalorder %s58_s18, %s94_s19  ;;  %p100_p10 = scmp.lt.s32.totalorder %s94_s19, %s94_s19 }
  0x16   :  { %v24_v6 = vcvt.s32.f32 %v23_v5 }
  0x17   :  { %v32_v3 = vmul.f32 1.442695, %v31_v2  ;;  %p101_p11 = por %p100_p10, %p99_p9 }
  0x18   :  { %v26_v9 = vmul.f32 0.5, %v24_v6 }
  0x19   :  { %68 = vpow2.f32 %v32_v3  ;;  %p102_p12 = pnand %p101_p11, %p95_p8 }
  0x1a   :  { %v27_v11 = vfloor.f32 %v26_v9 }
  0x1c   :  { %v28_v14 = vmul.f32 2.0, %v27_v11 }
  0x1e   :  { %v29_v18 = vsub.f32 %v24_v6, %v28_v14 }
  0x20   :  { %vm46_vm1 = vcmp.eq.f32.partialorder %v29_v18, 1.0 }
  0x23   :  { %v69_v7 = vpop.eup %68 }
  0x24   :  { %v35_v8 = vadd.f32 1.0, %v69_v7  ;;  %v38_v10 = vmul.f32 -0.5, %v69_v7  ;;  %v41_v13 = vand.u32 2147483647, %v69_v7 }
  0x26   :  { %70 = vlog2.f32 %v35_v8  ;;  %v39_v12 = vadd.f32 1.0, %v38_v10  ;;  %vm42_vm0 = vcmp.lt.f32.partialorder %v41_v13, 0.0004427343 }
  0x28   :  { %v40_v15 = vmul.f32 %v69_v7, %v39_v12 }
  0x30   :  { %v71_v16 = vpop.eup %70 }
  0x31   :  { %v37_v19 = vmul.f32 0.6931472, %v71_v16 }
  0x33   :  { %v43_v20 = vsel %vm42_vm0, %v40_v15, %v37_v19 }
  0x34   :  { %v44_v21 = vadd.f32 %v43_v20, %v34_v17 }
  0x36   :  { %v45_v22 = vadd.f32 1e-06, %v44_v21 }
  0x38   :  { %v49_v23 = vsel %vm46_vm1, %v45_v22, %v21_v0 }
  0x39   :  { %50 = vst [vmem:[#allocation5] sm:$0xff] %v49_v23 }
  0x3a   :  { %105 = shalt.err (!%p102_p12)
}
  0x3b   :  { %s106_s22 = scalar_lea.hbm %s157_s1, 128 }
  0x3c   :  { %p107_p13 = scmp.ne.s32.totalorder %s157_s1, %s106_s22  ;;  %p110_p0 = scmp.lt.u32.totalorder %s106_s22, %s157_s1 }
  0x3e   :  { %p112_p1 = pnand %p110_p0, %p107_p13 }
  0x40   :  { %115 = shalt.err (!%p112_p1)
}
  0x41   :  { %60 = dma.vmem_to_hbm [thread:$0]  %s58_s18, 128, %s157_s1, [#allocation4]  }
  0x42   :  { %118 = dma.done.wait [#allocation4], 128  }
  0x43   :  { %119 = vsyncadd [#allocation4], 4294967168 }
  0x44   :  { %64 = vsyncpa [#allocation3], 1 }
  0x45   :  { %65 = vsyncpa [#allocation4], 1 }

</bundles_post_ra>
